<compile_context>
chip_gen: v7x
topology: tpu7x:2x2x1
jax: 0.10.0
libtpu: 0.0.40
codegen_flags: <defaults>
</compile_context>

<pallas_src>
import numpy as np
import jax
import jax.numpy as jnp
from jax.experimental import pallas as pl
from jax.experimental.pallas import tpu as pltpu

_DB4 = np.array([0.2303778133088964, 0.7148465705529155, 0.6308807679298587,
                 -0.027983769416859854, -0.18703481171888114, 0.030841381835986965,
                 0.032883011666982945, -0.010597401785069032], dtype=np.float32)
_H = _DB4
_G = np.array([(-1.0) ** n * _DB4[7 - n] for n in range(8)], dtype=np.float32)
_H_REV = _H[::-1].copy()
_G_REV = _G[::-1].copy()
_PAD = 3
_K = 8


def _conv_matrix(f, n_out, n_in):
    """Matrix M with M[i, 2*i + p - PAD] = f[p] (stride-2, pad-3, kernel-8 1D conv)."""
    M = np.zeros((n_out, n_in), dtype=np.float32)
    for i in range(n_out):
        for p in range(_K):
            m = 2 * i + p - _PAD
            if 0 <= m < n_in:
                M[i, m] += f[p]
    return M


def build_fused_operators(H, W):
    """Fused (analysis -> zero-LL -> synthesis) separable operators.

    Returns:
      arow: (3, Hr, H)   fused row operators A_k = Rs_k^T @ Ra_k   (LH, HL, HH)
      bcol: (3, W,  Wr)  fused column operators B_k = Ca_k^T @ Cs_k (shared by
                         every channel -- no kron(I_C, .) anymore)
      Hr, Wr
    """
    Ho = (H + 2 * _PAD - _K) // 2 + 1
    Wo = (W + 2 * _PAD - _K) // 2 + 1
    Hr, Wr = 2 * Ho, 2 * Wo
    # (row_analysis, col_analysis, row_synthesis, col_synthesis) for LH, HL, HH
    bands = [(_H, _G, _H_REV, _G_REV),
             (_G, _H, _G_REV, _H_REV),
             (_G, _G, _G_REV, _G_REV)]
    arow, bcol = [], []
    for ar, ac, sr, sc in bands:
        Ra = _conv_matrix(ar, Ho, H)    # (Ho, H)
        Ca = _conv_matrix(ac, Wo, W)    # (Wo, W)
        Rs = _conv_matrix(sr, Ho, Hr)   # (Ho, Hr)
        Cs = _conv_matrix(sc, Wo, Wr)   # (Wo, Wr)
        arow.append((Rs.T @ Ra).astype(np.float32))   # (Hr, H)
        bcol.append((Ca.T @ Cs).astype(np.float32))   # (W, Wr)
    return (jnp.asarray(np.stack(arow)), jnp.asarray(np.stack(bcol)), Hr, Wr)


def _make_dwt_hp_kernel(C, H, Hr):
    def kernel(x_ref, arow_ref, bcol_ref, o_ref, acc_ref):
        # x_ref   : (1, C*H, W)    one batch element, channel-major rows
        # arow_ref: (3, Hr, H)     fused row (height) operators per HP band
        # bcol_ref: (3, W, Wr)     fused column (width) operators per HP band
        # o_ref   : (1, C*Hr, Wr)  normalized high-frequency reconstruction
        # acc_ref : (C*Hr, Wr)     VMEM scratch holding the unnormalized slab
        x = x_ref[0]                                                  # (C*H, W)

        # Column (width) pass: one matmul per band over ALL channels at once.
        t0 = jnp.dot(x, bcol_ref[0], preferred_element_type=jnp.float32)  # (C*H, Wr)
        t1 = jnp.dot(x, bcol_ref[1], preferred_element_type=jnp.float32)
        t2 = jnp.dot(x, bcol_ref[2], preferred_element_type=jnp.float32)

        a0 = arow_ref[0]
        a1 = arow_ref[1]
        a2 = arow_ref[2]

        # Row (height) pass per channel on aligned sublane slices, with the
        # per-batch min/max folded into the same pass (single-pass epilogue).
        mn = None
        mx = None
        for c in range(C):
            r0, r1 = c * H, (c + 1) * H
            y = jnp.dot(a0, t0[r0:r1, :], preferred_element_type=jnp.float32)
            y = y + jnp.dot(a1, t1[r0:r1, :], preferred_element_type=jnp.float32)
            y = y + jnp.dot(a2, t2[r0:r1, :], preferred_element_type=jnp.float32)
            acc_ref[c * Hr:(c + 1) * Hr, :] = y                       # (Hr, Wr)
            c_mn = jnp.min(y)
            c_mx = jnp.max(y)
            mn = c_mn if mn is None else jnp.minimum(mn, c_mn)
            mx = c_mx if mx is None else jnp.maximum(mx, c_mx)

        inv = 1.0 / (mx - mn + 1e-8)     # exact scalar divide (keep precision)
        o_ref[0] = (acc_ref[...] - mn) * inv   # single full-tile write
    return kernel


def dwt_frequency_extractor(x):
    """JAX/Pallas equivalent of DwtFrequencyExtractor.forward; x: (B, C, H, W)."""
    B, C, H, W = x.shape
    arow, bcol, Hr, Wr = build_fused_operators(H, W)

    # Channel-major folding: (B,C,H,W) -> (B, C*H, W) is a contiguous reshape
    # (no extra HBM pass), and the (B, C*Hr, Wr) kernel output reshapes back to
    # (B, C, Hr, Wr) for free as well.
    x_cm = x.astype(jnp.float32).reshape(B, C * H, W)

    # Explicit VMEM budget: double-buffered x/out blocks + operators + temporaries.
    itemsize = 4
    x_blk = C * H * W * itemsize
    o_blk = C * Hr * Wr * itemsize
    op_bytes = (3 * Hr * H + 3 * W * Wr) * itemsize
    tmp_bytes = (3 * C * H * Wr + C * Hr * Wr) * itemsize
    working_set = 2 * (x_blk + o_blk + op_bytes) + tmp_bytes
    vmem_limit = int(min(max(2 * working_set, 32 * 1024 * 1024), 48 * 1024 * 1024))

    kernel = _make_dwt_hp_kernel(C, H, Hr)

    out_cm = pl.pallas_call(
        kernel,
        out_shape=jax.ShapeDtypeStruct((B, C * Hr, Wr), jnp.float32),
        grid_spec=pltpu.PrefetchScalarGridSpec(
            num_scalar_prefetch=0,
            grid=(B,),
            in_specs=[
                pl.BlockSpec((1, C * H, W), lambda b: (b, 0, 0)),
                # Grid-invariant operators (constant index_map -> fetched once).
                # TODO(synk): single-buffer these with pipeline_mode=pl.Buffered(1).
                pl.BlockSpec((3, Hr, H), lambda b: (0, 0, 0)),
                pl.BlockSpec((3, W, Wr), lambda b: (0, 0, 0)),
            ],
            out_specs=pl.BlockSpec((1, C * Hr, Wr), lambda b: (b, 0, 0)),
            scratch_shapes=[pltpu.VMEM((C * Hr, Wr), jnp.float32)],
        ),
        compiler_params=pltpu.CompilerParams(
            dimension_semantics=("parallel",),
            vmem_limit_bytes=vmem_limit,
        ),
    )(x_cm, arow, bcol)

    # (B, C*Hr, Wr) -> (B, C, Hr, Wr)  (contiguous reshape, free)
    return out_cm.reshape(B, C, Hr, Wr)


def _ref_forward(x_np):
    """Direct (loopy) numpy translation of the PyTorch forward for verification."""
    B, C, H, W = x_np.shape
    filt = np.stack([np.outer(_H, _H), np.outer(_H, _G),
                     np.outer(_G, _H), np.outer(_G, _G)]).astype(np.float64)
    syn = np.stack([np.outer(_H_REV, _H_REV), np.outer(_H_REV, _G_REV),
                    np.outer(_G_REV, _H_REV), np.outer(_G_REV, _G_REV)]).astype(np.float64)
    Ho = (H + 2 * _PAD - _K) // 2 + 1
    Wo = (W + 2 * _PAD - _K) // 2 + 1
    Hr, Wr = 2 * Ho, 2 * Wo
    xpad = np.pad(x_np.astype(np.float64), ((0, 0), (0, 0), (_PAD, _PAD), (_PAD, _PAD)))
    coeffs = np.zeros((B, C, 4, Ho, Wo), np.float64)
    for i in range(Ho):
        for j in range(Wo):
            win = xpad[:, :, 2 * i:2 * i + _K, 2 * j:2 * j + _K]
            coeffs[:, :, :, i, j] = np.einsum('bcpq,kpq->bck', win, filt)
    coeffs[:, :, 0] = 0.0  # high_pass_filter: zero LL
    rec = np.zeros((B, C, Hr + 2 * _PAD, Wr + 2 * _PAD), np.float64)
    for i in range(Ho):
        for j in range(Wo):
            rec[:, :, 2 * i:2 * i + _K, 2 * j:2 * j + _K] += np.einsum(
                'bck,kpq->bcpq', coeffs[:, :, :, i, j], syn)
    rec = rec[:, :, _PAD:_PAD + Hr, _PAD:_PAD + Wr]
    mn = rec.reshape(B, -1).min(axis=1).reshape(B, 1, 1, 1)
    mx = rec.reshape(B, -1).max(axis=1).reshape(B, 1, 1, 1)
    return ((rec - mn) / (mx - mn + 1e-8)).astype(np.float32)


if __name__ == "__main__":
    key = jax.random.PRNGKey(0)
    x = jax.random.normal(key, (2, 4, 16, 16), dtype=jnp.float32)
    out = dwt_frequency_extractor(x)
    out = jax.block_until_ready(out)
    ref = _ref_forward(np.asarray(x))
    assert out.shape == ref.shape, (out.shape, ref.shape)
    np.testing.assert_allclose(np.asarray(out), ref, atol=1e-4, rtol=1e-3)
    print("KERNEL_OK")
</pallas_src>

<mosaic_0001>
module attributes {stable_mosaic.version = 11 : i64} {
  func.func @kernel(%arg0: i32, %arg1: memref<1x64x16xf32, #tpu.memory_space<vmem>>, %arg2: memref<3x16x16xf32, #tpu.memory_space<vmem>>, %arg3: memref<3x16x16xf32, #tpu.memory_space<vmem>>, %arg4: memref<1x64x16xf32, #tpu.memory_space<vmem>>, %arg5: memref<64x16xf32, #tpu.memory_space<vmem>>) attributes {dimension_semantics = [#tpu.dimension_semantics<parallel>], iteration_bounds = array<i64: 2>, scalar_prefetch = 0 : i64, scratch_operands = 1 : i64, tpu.core_type = #tpu.core_type<tc>, window_params = [{transform_indices = @transform_0, window_bounds = array<i64: 1, 64, 16>}, {pipeline_mode = #tpu.pipeline_mode<synchronous>, transform_indices = @transform_1, window_bounds = array<i64: 3, 16, 16>}, {pipeline_mode = #tpu.pipeline_mode<synchronous>, transform_indices = @transform_2, window_bounds = array<i64: 3, 16, 16>}, {transform_indices = @transform_3, window_bounds = array<i64: 1, 64, 16>}]} {
    %c0 = arith.constant 0 : index
    %c0_0 = arith.constant 0 : index
    %c0_1 = arith.constant 0 : index
    %0 = vector.load %arg1[%c0, %c0_0, %c0_1] : memref<1x64x16xf32, #tpu.memory_space<vmem>>, vector<1x64x16xf32>
    %1 = vector.shape_cast %0 : vector<1x64x16xf32> to vector<64x16xf32>
    %c0_2 = arith.constant 0 : index
    %c0_3 = arith.constant 0 : index
    %c0_4 = arith.constant 0 : index
    %2 = vector.load %arg3[%c0_2, %c0_3, %c0_4] : memref<3x16x16xf32, #tpu.memory_space<vmem>>, vector<1x16x16xf32>
    %3 = vector.shape_cast %2 : vector<1x16x16xf32> to vector<16x16xf32>
    %cst = arith.constant dense<0.000000e+00> : vector<64x16xf32>
    %4 = tpu.matmul %1, %3, %cst {dimension_numbers = #tpu.dot_dimension_numbers<[1], [0], [0], [1], [0, 0, 1, 1], [], []>} : vector<64x16xf32>, vector<16x16xf32>, vector<64x16xf32> -> vector<64x16xf32>
    %c1 = arith.constant 1 : index
    %c0_5 = arith.constant 0 : index
    %c0_6 = arith.constant 0 : index
    %5 = vector.load %arg3[%c1, %c0_5, %c0_6] : memref<3x16x16xf32, #tpu.memory_space<vmem>>, vector<1x16x16xf32>
    %6 = vector.shape_cast %5 : vector<1x16x16xf32> to vector<16x16xf32>
    %cst_7 = arith.constant dense<0.000000e+00> : vector<64x16xf32>
    %7 = tpu.matmul %1, %6, %cst_7 {dimension_numbers = #tpu.dot_dimension_numbers<[1], [0], [0], [1], [0, 0, 1, 1], [], []>} : vector<64x16xf32>, vector<16x16xf32>, vector<64x16xf32> -> vector<64x16xf32>
    %c2 = arith.constant 2 : index
    %c0_8 = arith.constant 0 : index
    %c0_9 = arith.constant 0 : index
    %8 = vector.load %arg3[%c2, %c0_8, %c0_9] : memref<3x16x16xf32, #tpu.memory_space<vmem>>, vector<1x16x16xf32>
    %9 = vector.shape_cast %8 : vector<1x16x16xf32> to vector<16x16xf32>
    %cst_10 = arith.constant dense<0.000000e+00> : vector<64x16xf32>
    %10 = tpu.matmul %1, %9, %cst_10 {dimension_numbers = #tpu.dot_dimension_numbers<[1], [0], [0], [1], [0, 0, 1, 1], [], []>} : vector<64x16xf32>, vector<16x16xf32>, vector<64x16xf32> -> vector<64x16xf32>
    %c0_11 = arith.constant 0 : index
    %c0_12 = arith.constant 0 : index
    %c0_13 = arith.constant 0 : index
    %11 = vector.load %arg2[%c0_11, %c0_12, %c0_13] : memref<3x16x16xf32, #tpu.memory_space<vmem>>, vector<1x16x16xf32>
    %12 = vector.shape_cast %11 : vector<1x16x16xf32> to vector<16x16xf32>
    %c1_14 = arith.constant 1 : index
    %c0_15 = arith.constant 0 : index
    %c0_16 = arith.constant 0 : index
    %13 = vector.load %arg2[%c1_14, %c0_15, %c0_16] : memref<3x16x16xf32, #tpu.memory_space<vmem>>, vector<1x16x16xf32>
    %14 = vector.shape_cast %13 : vector<1x16x16xf32> to vector<16x16xf32>
    %c2_17 = arith.constant 2 : index
    %c0_18 = arith.constant 0 : index
    %c0_19 = arith.constant 0 : index
    %15 = vector.load %arg2[%c2_17, %c0_18, %c0_19] : memref<3x16x16xf32, #tpu.memory_space<vmem>>, vector<1x16x16xf32>
    %16 = vector.shape_cast %15 : vector<1x16x16xf32> to vector<16x16xf32>
    %17 = vector.extract_strided_slice %4 {offsets = [0, 0], sizes = [16, 16], strides = [1, 1]} : vector<64x16xf32> to vector<16x16xf32>
    %cst_20 = arith.constant dense<0.000000e+00> : vector<16x16xf32>
    %18 = tpu.matmul %12, %17, %cst_20 {dimension_numbers = #tpu.dot_dimension_numbers<[1], [0], [0], [1], [0, 0, 1, 1], [], []>} : vector<16x16xf32>, vector<16x16xf32>, vector<16x16xf32> -> vector<16x16xf32>
    %19 = vector.extract_strided_slice %7 {offsets = [0, 0], sizes = [16, 16], strides = [1, 1]} : vector<64x16xf32> to vector<16x16xf32>
    %cst_21 = arith.constant dense<0.000000e+00> : vector<16x16xf32>
    %20 = tpu.matmul %14, %19, %cst_21 {dimension_numbers = #tpu.dot_dimension_numbers<[1], [0], [0], [1], [0, 0, 1, 1], [], []>} : vector<16x16xf32>, vector<16x16xf32>, vector<16x16xf32> -> vector<16x16xf32>
    %21 = arith.addf %18, %20 : vector<16x16xf32>
    %22 = vector.extract_strided_slice %10 {offsets = [0, 0], sizes = [16, 16], strides = [1, 1]} : vector<64x16xf32> to vector<16x16xf32>
    %cst_22 = arith.constant dense<0.000000e+00> : vector<16x16xf32>
    %23 = tpu.matmul %16, %22, %cst_22 {dimension_numbers = #tpu.dot_dimension_numbers<[1], [0], [0], [1], [0, 0, 1, 1], [], []>} : vector<16x16xf32>, vector<16x16xf32>, vector<16x16xf32> -> vector<16x16xf32>
    %24 = arith.addf %21, %23 : vector<16x16xf32>
    %c0_23 = arith.constant 0 : index
    %c0_24 = arith.constant 0 : index
    %25 = vector.load %arg5[%c0_23, %c0_24] : memref<64x16xf32, #tpu.memory_space<vmem>>, vector<16x16xf32>
    tpu.vector_store %arg5[%c0_23, %c0_24], %24 {strides = array<i32>} : memref<64x16xf32, #tpu.memory_space<vmem>>, vector<16x16xf32>,
    %26 = vector.shape_cast %24 : vector<16x16xf32> to vector<1x16x16xf32>
    %cst_25 = arith.constant dense<0x7F800000> : vector<1xf32>
    %27 = vector.multi_reduction <minimumf>, %26, %cst_25 [1, 2] : vector<1x16x16xf32> to vector<1xf32>
    %28 = vector.shape_cast %27 : vector<1xf32> to vector<1x1x1xf32>
    %29 = vector.extract %28[0, 0, 0] : f32 from vector<1x1x1xf32>
    %30 = vector.shape_cast %24 : vector<16x16xf32> to vector<1x16x16xf32>
    %cst_26 = arith.constant dense<0xFF800000> : vector<1xf32>
    %31 = vector.multi_reduction <maximumf>, %30, %cst_26 [1, 2] : vector<1x16x16xf32> to vector<1xf32>
    %32 = vector.shape_cast %31 : vector<1xf32> to vector<1x1x1xf32>
    %33 = vector.extract %32[0, 0, 0] : f32 from vector<1x1x1xf32>
    %34 = vector.extract_strided_slice %4 {offsets = [16, 0], sizes = [16, 16], strides = [1, 1]} : vector<64x16xf32> to vector<16x16xf32>
    %cst_27 = arith.constant dense<0.000000e+00> : vector<16x16xf32>
    %35 = tpu.matmul %12, %34, %cst_27 {dimension_numbers = #tpu.dot_dimension_numbers<[1], [0], [0], [1], [0, 0, 1, 1], [], []>} : vector<16x16xf32>, vector<16x16xf32>, vector<16x16xf32> -> vector<16x16xf32>
    %36 = vector.extract_strided_slice %7 {offsets = [16, 0], sizes = [16, 16], strides = [1, 1]} : vector<64x16xf32> to vector<16x16xf32>
    %cst_28 = arith.constant dense<0.000000e+00> : vector<16x16xf32>
    %37 = tpu.matmul %14, %36, %cst_28 {dimension_numbers = #tpu.dot_dimension_numbers<[1], [0], [0], [1], [0, 0, 1, 1], [], []>} : vector<16x16xf32>, vector<16x16xf32>, vector<16x16xf32> -> vector<16x16xf32>
    %38 = arith.addf %35, %37 : vector<16x16xf32>
    %39 = vector.extract_strided_slice %10 {offsets = [16, 0], sizes = [16, 16], strides = [1, 1]} : vector<64x16xf32> to vector<16x16xf32>
    %cst_29 = arith.constant dense<0.000000e+00> : vector<16x16xf32>
    %40 = tpu.matmul %16, %39, %cst_29 {dimension_numbers = #tpu.dot_dimension_numbers<[1], [0], [0], [1], [0, 0, 1, 1], [], []>} : vector<16x16xf32>, vector<16x16xf32>, vector<16x16xf32> -> vector<16x16xf32>
    %41 = arith.addf %38, %40 : vector<16x16xf32>
    %c16 = arith.constant 16 : index
    %c0_30 = arith.constant 0 : index
    %42 = vector.load %arg5[%c16, %c0_30] : memref<64x16xf32, #tpu.memory_space<vmem>>, vector<16x16xf32>
    tpu.vector_store %arg5[%c16, %c0_30], %41 {strides = array<i32>} : memref<64x16xf32, #tpu.memory_space<vmem>>, vector<16x16xf32>,
    %43 = vector.shape_cast %41 : vector<16x16xf32> to vector<1x16x16xf32>
    %cst_31 = arith.constant dense<0x7F800000> : vector<1xf32>
    %44 = vector.multi_reduction <minimumf>, %43, %cst_31 [1, 2] : vector<1x16x16xf32> to vector<1xf32>
    %45 = vector.shape_cast %44 : vector<1xf32> to vector<1x1x1xf32>
    %46 = vector.extract %45[0, 0, 0] : f32 from vector<1x1x1xf32>
    %47 = vector.shape_cast %41 : vector<16x16xf32> to vector<1x16x16xf32>
    %cst_32 = arith.constant dense<0xFF800000> : vector<1xf32>
    %48 = vector.multi_reduction <maximumf>, %47, %cst_32 [1, 2] : vector<1x16x16xf32> to vector<1xf32>
    %49 = vector.shape_cast %48 : vector<1xf32> to vector<1x1x1xf32>
    %50 = vector.extract %49[0, 0, 0] : f32 from vector<1x1x1xf32>
    %51 = arith.minimumf %29, %46 : f32
    %52 = arith.maximumf %33, %50 : f32
    %53 = vector.extract_strided_slice %4 {offsets = [32, 0], sizes = [16, 16], strides = [1, 1]} : vector<64x16xf32> to vector<16x16xf32>
    %cst_33 = arith.constant dense<0.000000e+00> : vector<16x16xf32>
    %54 = tpu.matmul %12, %53, %cst_33 {dimension_numbers = #tpu.dot_dimension_numbers<[1], [0], [0], [1], [0, 0, 1, 1], [], []>} : vector<16x16xf32>, vector<16x16xf32>, vector<16x16xf32> -> vector<16x16xf32>
    %55 = vector.extract_strided_slice %7 {offsets = [32, 0], sizes = [16, 16], strides = [1, 1]} : vector<64x16xf32> to vector<16x16xf32>
    %cst_34 = arith.constant dense<0.000000e+00> : vector<16x16xf32>
    %56 = tpu.matmul %14, %55, %cst_34 {dimension_numbers = #tpu.dot_dimension_numbers<[1], [0], [0], [1], [0, 0, 1, 1], [], []>} : vector<16x16xf32>, vector<16x16xf32>, vector<16x16xf32> -> vector<16x16xf32>
    %57 = arith.addf %54, %56 : vector<16x16xf32>
    %58 = vector.extract_strided_slice %10 {offsets = [32, 0], sizes = [16, 16], strides = [1, 1]} : vector<64x16xf32> to vector<16x16xf32>
    %cst_35 = arith.constant dense<0.000000e+00> : vector<16x16xf32>
    %59 = tpu.matmul %16, %58, %cst_35 {dimension_numbers = #tpu.dot_dimension_numbers<[1], [0], [0], [1], [0, 0, 1, 1], [], []>} : vector<16x16xf32>, vector<16x16xf32>, vector<16x16xf32> -> vector<16x16xf32>
    %60 = arith.addf %57, %59 : vector<16x16xf32>
    %c32 = arith.constant 32 : index
    %c0_36 = arith.constant 0 : index
    %61 = vector.load %arg5[%c32, %c0_36] : memref<64x16xf32, #tpu.memory_space<vmem>>, vector<16x16xf32>
    tpu.vector_store %arg5[%c32, %c0_36], %60 {strides = array<i32>} : memref<64x16xf32, #tpu.memory_space<vmem>>, vector<16x16xf32>,
    %62 = vector.shape_cast %60 : vector<16x16xf32> to vector<1x16x16xf32>
    %cst_37 = arith.constant dense<0x7F800000> : vector<1xf32>
    %63 = vector.multi_reduction <minimumf>, %62, %cst_37 [1, 2] : vector<1x16x16xf32> to vector<1xf32>
    %64 = vector.shape_cast %63 : vector<1xf32> to vector<1x1x1xf32>
    %65 = vector.extract %64[0, 0, 0] : f32 from vector<1x1x1xf32>
    %66 = vector.shape_cast %60 : vector<16x16xf32> to vector<1x16x16xf32>
    %cst_38 = arith.constant dense<0xFF800000> : vector<1xf32>
    %67 = vector.multi_reduction <maximumf>, %66, %cst_38 [1, 2] : vector<1x16x16xf32> to vector<1xf32>
    %68 = vector.shape_cast %67 : vector<1xf32> to vector<1x1x1xf32>
    %69 = vector.extract %68[0, 0, 0] : f32 from vector<1x1x1xf32>
    %70 = arith.minimumf %51, %65 : f32
    %71 = arith.maximumf %52, %69 : f32
    %72 = vector.extract_strided_slice %4 {offsets = [48, 0], sizes = [16, 16], strides = [1, 1]} : vector<64x16xf32> to vector<16x16xf32>
    %cst_39 = arith.constant dense<0.000000e+00> : vector<16x16xf32>
    %73 = tpu.matmul %12, %72, %cst_39 {dimension_numbers = #tpu.dot_dimension_numbers<[1], [0], [0], [1], [0, 0, 1, 1], [], []>} : vector<16x16xf32>, vector<16x16xf32>, vector<16x16xf32> -> vector<16x16xf32>
    %74 = vector.extract_strided_slice %7 {offsets = [48, 0], sizes = [16, 16], strides = [1, 1]} : vector<64x16xf32> to vector<16x16xf32>
    %cst_40 = arith.constant dense<0.000000e+00> : vector<16x16xf32>
    %75 = tpu.matmul %14, %74, %cst_40 {dimension_numbers = #tpu.dot_dimension_numbers<[1], [0], [0], [1], [0, 0, 1, 1], [], []>} : vector<16x16xf32>, vector<16x16xf32>, vector<16x16xf32> -> vector<16x16xf32>
    %76 = arith.addf %73, %75 : vector<16x16xf32>
    %77 = vector.extract_strided_slice %10 {offsets = [48, 0], sizes = [16, 16], strides = [1, 1]} : vector<64x16xf32> to vector<16x16xf32>
    %cst_41 = arith.constant dense<0.000000e+00> : vector<16x16xf32>
    %78 = tpu.matmul %16, %77, %cst_41 {dimension_numbers = #tpu.dot_dimension_numbers<[1], [0], [0], [1], [0, 0, 1, 1], [], []>} : vector<16x16xf32>, vector<16x16xf32>, vector<16x16xf32> -> vector<16x16xf32>
    %79 = arith.addf %76, %78 : vector<16x16xf32>
    %c48 = arith.constant 48 : index
    %c0_42 = arith.constant 0 : index
    %80 = vector.load %arg5[%c48, %c0_42] : memref<64x16xf32, #tpu.memory_space<vmem>>, vector<16x16xf32>
    tpu.vector_store %arg5[%c48, %c0_42], %79 {strides = array<i32>} : memref<64x16xf32, #tpu.memory_space<vmem>>, vector<16x16xf32>,
    %81 = vector.shape_cast %79 : vector<16x16xf32> to vector<1x16x16xf32>
    %cst_43 = arith.constant dense<0x7F800000> : vector<1xf32>
    %82 = vector.multi_reduction <minimumf>, %81, %cst_43 [1, 2] : vector<1x16x16xf32> to vector<1xf32>
    %83 = vector.shape_cast %82 : vector<1xf32> to vector<1x1x1xf32>
    %84 = vector.extract %83[0, 0, 0] : f32 from vector<1x1x1xf32>
    %85 = vector.shape_cast %79 : vector<16x16xf32> to vector<1x16x16xf32>
    %cst_44 = arith.constant dense<0xFF800000> : vector<1xf32>
    %86 = vector.multi_reduction <maximumf>, %85, %cst_44 [1, 2] : vector<1x16x16xf32> to vector<1xf32>
    %87 = vector.shape_cast %86 : vector<1xf32> to vector<1x1x1xf32>
    %88 = vector.extract %87[0, 0, 0] : f32 from vector<1x1x1xf32>
    %89 = arith.minimumf %70, %84 : f32
    %90 = arith.maximumf %71, %88 : f32
    %91 = arith.subf %90, %89 : f32
    %cst_45 = arith.constant 9.99999993E-9 : f32
    %92 = arith.addf %91, %cst_45 : f32
    %cst_46 = arith.constant 1.000000e+00 : f32
    %93 = arith.divf %cst_46, %92 : f32
    %c0_47 = arith.constant 0 : index
    %c0_48 = arith.constant 0 : index
    %94 = vector.load %arg5[%c0_47, %c0_48] : memref<64x16xf32, #tpu.memory_space<vmem>>, vector<64x16xf32>
    %95 = vector.broadcast %89 : f32 to vector<64x16xf32>
    %96 = arith.subf %94, %95 : vector<64x16xf32>
    %97 = vector.broadcast %93 : f32 to vector<64x16xf32>
    %98 = arith.mulf %96, %97 : vector<64x16xf32>
    %c0_49 = arith.constant 0 : index
    %c0_50 = arith.constant 0 : index
    %c0_51 = arith.constant 0 : index
    %99 = vector.load %arg4[%c0_49, %c0_50, %c0_51] : memref<1x64x16xf32, #tpu.memory_space<vmem>>, vector<1x64x16xf32>
    %100 = vector.shape_cast %99 : vector<1x64x16xf32> to vector<64x16xf32>
    %101 = vector.shape_cast %98 : vector<64x16xf32> to vector<1x64x16xf32>
    tpu.vector_store %arg4[%c0_49, %c0_50, %c0_51], %101 {strides = array<i32>} : memref<1x64x16xf32, #tpu.memory_space<vmem>>, vector<1x64x16xf32>,
    return
  }
  func.func @transform_0(%arg0: i32) -> (i32, i32, i32) {
    %c0_i32 = arith.constant 0 : i32
    %c0_i32_0 = arith.constant 0 : i32
    %c0_i32_1 = arith.constant 0 : i32
    return %arg0, %c0_i32, %c0_i32_0 : i32, i32, i32
  }
  func.func @transform_1(%arg0: i32) -> (i32, i32, i32) {
    %c0_i32 = arith.constant 0 : i32
    %c0_i32_0 = arith.constant 0 : i32
    %c0_i32_1 = arith.constant 0 : i32
    %c0_i32_2 = arith.constant 0 : i32
    return %c0_i32, %c0_i32_0, %c0_i32_1 : i32, i32, i32
  }
  func.func @transform_2(%arg0: i32) -> (i32, i32, i32) {
    %c0_i32 = arith.constant 0 : i32
    %c0_i32_0 = arith.constant 0 : i32
    %c0_i32_1 = arith.constant 0 : i32
    %c0_i32_2 = arith.constant 0 : i32
    return %c0_i32, %c0_i32_0, %c0_i32_1 : i32, i32, i32
  }
  func.func @transform_3(%arg0: i32) -> (i32, i32, i32) {
    %c0_i32 = arith.constant 0 : i32
    %c0_i32_0 = arith.constant 0 : i32
    %c0_i32_1 = arith.constant 0 : i32
    return %arg0, %c0_i32, %c0_i32_0 : i32, i32, i32
  }
}

</mosaic_0001>

<bundles_post_ra>
// kernel: tpu_custom_call.1
= control target key start
LH: loop header
LB: loop body
LE: loop exit
PB: predicated region body
PF: predicated region fallthrough
CT: control target
= control target key end

     0   :  { %s2078_s12 = smov 0   ;;  %s2224_s0 = inlined_call_operand.vmem [shape: f32[2,64,16], index: 0, kind: input, shape index: {}]   ;;  %s2225_s1 = inlined_call_operand.vmem [shape: f32[3,16,16], index: 1, kind: input, shape index: {}]   ;;  %s2226_s2 = inlined_call_operand.vmem [shape: f32[3,16,16], index: 2, kind: input, shape index: {}]   ;;  %s2227_s3 = inlined_call_operand.vmem [shape: f32[2,64,16], index: 3, kind: output, shape index: {}]  }
   0x1 LB: > { %s1665_s13 = sadd.s32 4294967295, %s2056_s12   ;;  %p1669_p0 = scmp.ge.s32.totalorder %s2056_s12, 1  ;;  %s2056_s12 = sphi %s2078_s12, %s13_s12  }
   0x2   : > { %p137_p1 = scmp.lt.s32.totalorder %s2056_s12, 3 }
   0x4   : > { %p138_p2 = pnand %p1669_p0, %p137_p1 }
   0x5   : > { %v179_v0 = vld [vmem:[%s2226_s2] sm:$0xff] (!%p138_p2)  ;;  %v180_v1 = vld [vmem:[%s2226_s2 + $0x8] sm:$0xff] (!%p138_p2)  ;;  %v1682_v2 = vld [vmem:[%s2226_s2 + $0x10] sm:$0xff] (!%p138_p2)  ;;  %p161_p3 = scmp.lt.s32.totalorder (!%p138_p2), %s1665_s13, 1  ;;  %vm181_vm0 = vcmask (!%p138_p2), 130048  }
   0x6   : > { %141 = sbr.rel (%p138_p2) target bundleno = 804 (0x324), region = 32  ;;  %v1944_v3 = vpack.c.bf16 (!%p138_p2), %v180_v1, %v179_v0  ;;  %v1683_v4 = vld [vmem:[%s2226_s2 + $0x18] sm:$0xff] (!%p138_p2)  ;;  %v1692_v6 = vld [vmem:[%s2226_s2 + $0x20] sm:$0xff] (!%p138_p2)  ;;  %v1693_v7 = vld [vmem:[%s2226_s2 + $0x28] sm:$0xff] (!%p138_p2) }
   0x7   : > { %v1948_v5 = vpack.c.bf16 (!%p138_p2), %v1683_v4, %v1682_v2  ;;  %v1952_v13 = vpack.c.bf16 (!%p138_p2), %v1693_v7, %v1692_v6  ;;  %v2139_v17 = vld [vmem:[%s2225_s1 + $0x10] sm:$0xff] (!%p138_p2)  ;;  %v1703_v33 = vld [vmem:[%s2225_s1 + $0x18] sm:$0xff] (!%p138_p2)  ;;  %v527_v36 = vld [vmem:[%s2225_s1] sm:$0xff] (!%p138_p2) }
   0x8   : > { %1945 = vmatprep.subr.bf16.mxu0 (!%p138_p2), %v1944_v3  ;;  %v528_v43 = vld [vmem:[%s2225_s1 + $0x8] sm:$0xff] (!%p138_p2)  ;;  %v1704_v45 = vld [vmem:[%s2225_s1 + $0x20] sm:$0xff] (!%p138_p2) }
   0x9   : > { %2004 = vmatprep.subr.bf16.mxu1 (!%p138_p2), %v1948_v5  ;;  %1947 = vmatpush3.bf16.msra.mxu0 (!%p138_p2), %v1944_v3  ;;  %v1705_v56 = vld [vmem:[%s2225_s1 + $0x28] sm:$0xff] (!%p138_p2) }
   0xa   : > { %2005 = vmatpush3.bf16.msra.mxu1 (!%p138_p2), %v1948_v5  ;;  %1949 = vmatprep.subr.bf16.mxu0 (!%p138_p2), %v1948_v5 }
   0xd   : > { %s2229_s13 = smov (!%p161_p3, %s1665_s13), 1 }
   0xe   : > { %s1732_s22 = sshll.u32 %s2229_s13, 6 }
   0xf   : > { %s165_s29 = scalar_lea.vmem %s2224_s0, %s1732_s22  ;;  %s170_s10 = scalar_lea.vmem %s2227_s3, %s1732_s22 }
  0x10   : > { %v171_v8 = vld [vmem:[%s165_s29] sm:$0xff]  ;;  %v173_v9 = vld [vmem:[%s165_s29 + $0x10] sm:$0xff]  ;;  %v172_v10 = vld [vmem:[%s165_s29 + $0x8] sm:$0xff] }
  0x11   : > { %1816 = vmatprep.mubr.msk.f32.mxu0 %vm181_vm0, %v171_v8  ;;  %1835 = vmatprep.mubr.msk.f32.mxu1 %vm181_vm0, %v173_v9  ;;  %v174_v11 = vld [vmem:[%s165_s29 + $0x18] sm:$0xff]  ;;  %v175_v12 = vld [vmem:[%s165_s29 + $0x20] sm:$0xff]  ;;  %v176_v14 = vld [vmem:[%s165_s29 + $0x28] sm:$0xff] }
  0x12   : > { %1817 = vmatmul.mubr.msk.f32.vlgmr.msra.gmra.mrb[0].mxu0 %vm181_vm0, %v172_v10  ;;  %1836 = vmatmul.mubr.msk.f32.vlgmr.msra.gmra.mrb[0].mxu1 %vm181_vm0, %v174_v11  ;;  %v177_v15 = vld [vmem:[%s165_s29 + $0x30] sm:$0xff]  ;;  %v178_v16 = vld [vmem:[%s165_s29 + $0x38] sm:$0xff] }
  0x13   : > { %1819 = vmatprep.mubr.msk.f32.mxu0 %vm181_vm0, %v173_v9  ;;  %1838 = vmatprep.mubr.msk.f32.mxu1 %vm181_vm0, %v175_v12 }
  0x14   : > { %1951 = vmatpush3.bf16.msra.mxu0 %v1948_v5 }
  0x15   : > { %1953 = vmatprep.subr.bf16.mxu0 %v1952_v13 }
  0x16   : > { %1820 = vmatmul.mubr.msk.f32.gmra.mrb[2].mxu0 %vm181_vm0, %v174_v11  ;;  %1839 = vmatmul.mubr.msk.f32.gmra.mrb[2].mxu1 %vm181_vm0, %v176_v14 }
  0x17   : > { %1822 = vmatprep.mubr.msk.f32.mxu0 %vm181_vm0, %v175_v12  ;;  %1841 = vmatprep.mubr.msk.f32.mxu1 %vm181_vm0, %v177_v15 }
  0x1a   : > { %1823 = vmatmul.mubr.msk.f32.gmra.mrb[4].mxu0 %vm181_vm0, %v176_v14  ;;  %1842 = vmatmul.mubr.msk.f32.gmra.mrb[4].mxu1 %vm181_vm0, %v178_v16 }
  0x1b   : > { %1825 = vmatprep.mubr.msk.f32.mxu0 %vm181_vm0, %v177_v15  ;;  %1864 = vmatprep.mubr.msk.f32.mxu1 %vm181_vm0, %v2139_v17 }
  0x1e   : > { %1826 = vmatmul.mubr.msk.f32.gmra.mrb[6].mxu0 %vm181_vm0, %v178_v16 }
  0x1f   : > { %1832 = vmatprep.mubr.msk.f32.mxu0 %vm181_vm0, %v171_v8 }
  0x22   : > { %1833 = vmatmul.mubr.msk.f32.vlgmr.msra.gmra.mrb[8].mxu0 %vm181_vm0, %v172_v10 }
  0x23   : > { %1955 = vmatpush3.bf16.msra.mxu0 %v1952_v13  ;;  %1848 = vmatprep.mubr.msk.f32.mxu0 %vm181_vm0, %v171_v8 }
  0x26   : > { %1849 = vmatmul.mubr.msk.f32.vlgmr.msra.gmra.mrb[10].mxu0 %vm181_vm0, %v172_v10 }
  0x27   : > { %1851 = vmatprep.mubr.msk.f32.mxu0 %vm181_vm0, %v173_v9 }
  0x2a   : > { %1852 = vmatmul.mubr.msk.f32.gmra.mrb[12].mxu0 %vm181_vm0, %v174_v11 }
  0x2b   : > { %1854 = vmatprep.mubr.msk.f32.mxu0 %vm181_vm0, %v175_v12 }
  0x2e   : > { %1855 = vmatmul.mubr.msk.f32.gmra.mrb[14].mxu0 %vm181_vm0, %v176_v14 }
  0x2f   : > { %1857 = vmatprep.mubr.msk.f32.mxu0 %vm181_vm0, %v177_v15 }
  0x32   : > { %1858 = vmatmul.mubr.msk.f32.gmra.mrb[16].mxu0 %vm181_vm0, %v178_v16 }
  0x33   : > { %1906 = vmatprep.mubr.msk.f32.mxu0 %vm181_vm0, %v2139_v17 }
  0xe5   : > { %v1818_v18 = vpop.f32.mrb[0].mxu0  ;;  %v1837_v19 = vpop.f32.mrb[0].mxu1 }
  0xe6   : > { %v272_v20 = vpop.f32.mrb[1].mxu0  ;;  %v390_v21 = vpop.f32.mrb[1].mxu1 }
  0xe7   : > { %v1960_v22 = vpack.c.bf16 %v1818_v18, %v272_v20  ;;  %v1968_v23 = vpack.c.bf16 %v1837_v19, %v390_v21 }
  0xe9   : > { %v1821_v24 = vpop.f32.mrb[2].mxu0  ;;  %v1840_v25 = vpop.f32.mrb[2].mxu1 }
  0xea   : > { %v282_v26 = vpop.f32.mrb[3].mxu0  ;;  %v400_v27 = vpop.f32.mrb[3].mxu1 }
  0xeb   : > { %v1972_v28 = vpack.c.bf16 %v1821_v24, %v282_v26  ;;  %v1980_v29 = vpack.c.bf16 %v1840_v25, %v400_v27 }
  0xed   : > { %v1824_v30 = vpop.f32.mrb[4].mxu0  ;;  %1981 = vmatprep.subr.bf16.mxu0 %v1980_v29  ;;  %v1843_v31 = vpop.f32.mrb[4].mxu1 }
  0xee   : > { %v292_v32 = vpop.f32.mrb[5].mxu0  ;;  %1983 = vmatpush3.bf16.msra.mxu0 %v1980_v29  ;;  %v410_v34 = vpop.f32.mrb[5].mxu1 }
  0xef   : > { %v1984_v35 = vpack.c.bf16 %v1824_v30, %v292_v32  ;;  %v1992_v37 = vpack.c.bf16 %v1843_v31, %v410_v34 }
  0xf1   : > { %v1827_v38 = vpop.f32.mrb[6].mxu0  ;;  %1985 = vmatprep.subr.bf16.mxu0 %v1984_v35  ;;  %1907 = vmatmul.mubr.msk.f32.vlgmr.msra.gmra.mrb[18].mxu0 %vm181_vm0, %v1703_v33 }
  0xf2   : > { %v302_v39 = vpop.f32.mrb[7].mxu0  ;;  %1987 = vmatpush3.bf16.msra.mxu0 %v1984_v35  ;;  %1913 = vmatprep.mubr.msk.f32.mxu0 %vm181_vm0, %v527_v36 }
  0xf3   : > { %v1996_v40 = vpack.c.bf16 %v1827_v38, %v302_v39 }
  0xf5   : > { %v1834_v41 = vpop.f32.mrb[8].mxu0 }
  0xf6   : > { %v380_v42 = vpop.f32.mrb[9].mxu0 }
  0xf7   : > { %v1956_v44 = vpack.c.bf16 %v1834_v41, %v380_v42 }
  0xf9   : > { %1957 = vmatprep.subr.bf16.mxu1 %v1956_v44  ;;  %v1850_v46 = vpop.f32.mrb[10].mxu0  ;;  %1914 = vmatmul.mubr.msk.f32.vlgmr.msra.gmra.mrb[18].mxu0 %vm181_vm0, %v528_v43 }
  0xfa   : > { %1959 = vmatpush3.bf16.msra.mxu1 %v1956_v44  ;;  %v488_v47 = vpop.f32.mrb[11].mxu0  ;;  %1920 = vmatprep.mubr.msk.f32.mxu0 %vm181_vm0, %v1704_v45 }
  0xfb   : > { %1961 = vmatprep.subr.bf16.mxu1 %v1960_v22  ;;  %v1964_v48 = vpack.c.bf16 %v1850_v46, %v488_v47 }
  0xfd   : > { %1865 = vmatmul.mubr.msk.f32.vlgmr.msra.gmra.mrb[6].mxu1 %vm181_vm0, %v1703_v33  ;;  %v1853_v49 = vpop.f32.mrb[12].mxu0 }
  0xfe   : > { %1963 = vmatpush3.bf16.msra.mxu1 %v1960_v22  ;;  %v498_v50 = vpop.f32.mrb[13].mxu0  ;;  %1871 = vmatprep.mubr.msk.f32.mxu1 %vm181_vm0, %v527_v36 }
  0xff   : > { %v1976_v51 = vpack.c.bf16 %v1853_v49, %v498_v50  ;;  %1965 = vmatprep.subr.bf16.mxu1 %v1964_v48 }
 0x101   : > { %v1856_v52 = vpop.f32.mrb[14].mxu0 }
 0x102   : > { %v508_v53 = vpop.f32.mrb[15].mxu0 }
 0x103   : > { %v1988_v54 = vpack.c.bf16 %v1856_v52, %v508_v53 }
 0x105   : > { %1872 = vmatmul.mubr.msk.f32.vlgmr.msra.gmra.mrb[6].mxu1 %vm181_vm0, %v528_v43  ;;  %1989 = vmatprep.subr.bf16.mxu0 %v1988_v54  ;;  %v1859_v55 = vpop.f32.mrb[16].mxu0 }
 0x106   : > { %1991 = vmatpush3.bf16.msra.mxu0 %v1988_v54  ;;  %1967 = vmatpush3.bf16.msra.mxu1 %v1964_v48  ;;  %v518_v57 = vpop.f32.mrb[17].mxu0 }
 0x107   : > { %1878 = vmatprep.mubr.msk.f32.mxu1 %vm181_vm0, %v1704_v45  ;;  %1969 = vmatprep.subr.bf16.mxu1 %v1968_v23  ;;  %v2000_v58 = vpack.c.bf16 %v1859_v55, %v518_v57 }
 0x109   : > { %1921 = vmatmul.mubr.msk.f32.vlgmr.msra.gmra.mrb[18].mxu0 %vm181_vm0, %v1705_v56 }
 0x10d   : > { %1879 = vmatmul.mubr.msk.f32.vlgmr.msra.gmra.mrb[6].mxu1 %vm181_vm0, %v1705_v56 }
 0x10e   : > { %1971 = vmatpush3.bf16.msra.mxu1 %v1968_v23  ;;  %1885 = vmatprep.mubr.msk.f32.mxu1 %vm181_vm0, %v2139_v17 }
 0x10f   : > { %1973 = vmatprep.subr.bf16.mxu1 %v1972_v28 }
 0x111   : > { %1886 = vmatmul.mubr.msk.f32.vlgmr.msra.gmra.mrb[8].mxu1 %vm181_vm0, %v1703_v33 }
 0x112   : > { %1975 = vmatpush3.bf16.msra.mxu1 %v1972_v28  ;;  %1892 = vmatprep.mubr.msk.f32.mxu1 %vm181_vm0, %v527_v36 }
 0x113   : > { %1977 = vmatprep.subr.bf16.mxu1 %v1976_v51 }
 0x119   : > { %1893 = vmatmul.mubr.msk.f32.vlgmr.msra.gmra.mrb[8].mxu1 %vm181_vm0, %v528_v43 }
 0x11a   : > { %1979 = vmatpush3.bf16.msra.mxu1 %v1976_v51  ;;  %1899 = vmatprep.mubr.msk.f32.mxu1 %vm181_vm0, %v1704_v45 }
 0x11b   : > { %1993 = vmatprep.subr.bf16.mxu1 %v1992_v37 }
 0x121   : > { %1900 = vmatmul.mubr.msk.f32.vlgmr.msra.gmra.mrb[8].mxu1 %vm181_vm0, %v1705_v56 }
 0x122   : > { %1995 = vmatpush3.bf16.msra.mxu1 %v1992_v37  ;;  %1927 = vmatprep.mubr.msk.f32.mxu1 %vm181_vm0, %v2139_v17 }
 0x123   : > { %1997 = vmatprep.subr.bf16.mxu1 %v1996_v40 }
 0x125   : > { %1928 = vmatmul.mubr.msk.f32.vlgmr.msra.gmra.mrb[10].mxu1 %vm181_vm0, %v1703_v33 }
 0x126   : > { %1999 = vmatpush3.bf16.msra.mxu1 %v1996_v40  ;;  %1934 = vmatprep.mubr.msk.f32.mxu1 %vm181_vm0, %v527_v36 }
 0x127   : > { %2001 = vmatprep.subr.bf16.mxu1 %v2000_v58 }
 0x12d   : > { %1935 = vmatmul.mubr.msk.f32.vlgmr.msra.gmra.mrb[10].mxu1 %vm181_vm0, %v528_v43 }
 0x12e   : > { %2003 = vmatpush3.bf16.msra.mxu1 %v2000_v58  ;;  %1941 = vmatprep.mubr.msk.f32.mxu1 %vm181_vm0, %v1704_v45 }
 0x135   : > { %1942 = vmatmul.mubr.msk.f32.vlgmr.msra.gmra.mrb[10].mxu1 %vm181_vm0, %v1705_v56 }
 0x1dc   : > { %v1922_v59 = vpop.f32.mrb[18].mxu0 }
 0x1dd   : > { %1289 = vst.msk [vmem:[#allocation2 + $0x28] sm:$0xff] %vm181_vm0, %v1922_v59  ;;  %v1277_v60 = vpop.f32.mrb[19].mxu0  ;;  %v1291_v61 = vsel %vm181_vm0, %v1922_v59, inf  ;;  %v1303_v62 = vsel %vm181_vm0, %v1922_v59, -inf }
 0x1de   : > { %1288 = vst.msk [vmem:[#allocation2 + $0x20] sm:$0xff] %vm181_vm0, %v1277_v60  ;;  %v1290_v63 = vsel %vm181_vm0, %v1277_v60, inf  ;;  %v1302_v0 = vsel %vm181_vm0, %v1277_v60, -inf }
 0x1df   : > { %v1292_v1 = vmin.f32 %v1290_v63, %v1291_v61  ;;  %v1304_v2 = vmax.f32 %v1302_v0, %v1303_v62 }
 0x1e0   : > { %v1880_v3 = vpop.f32.mrb[6].mxu1 }
 0x1e1   : > { %781 = vst.msk [vmem:[#allocation2 + $0x8] sm:$0xff] %vm181_vm0, %v1880_v3  ;;  %v769_v4 = vpop.f32.mrb[7].mxu1  ;;  %1293 = vmin.xlane.f32.xlu0 %v1292_v1  ;;  %v783_v5 = vsel %vm181_vm0, %v1880_v3, inf  ;;  %v795_v6 = vsel %vm181_vm0, %v1880_v3, -inf  ;;  %1305 = vmax.xlane.f32.xlu1 %v1304_v2 }
 0x1e2   : > { %780 = vst.msk [vmem:[#allocation2] sm:$0xff] %vm181_vm0, %v769_v4  ;;  %v782_v7 = vsel %vm181_vm0, %v769_v4, inf  ;;  %v794_v8 = vsel %vm181_vm0, %v769_v4, -inf }
 0x1e3   : > { %v784_v9 = vmin.f32 %v782_v7, %v783_v5  ;;  %v796_v10 = vmax.f32 %v794_v8, %v795_v6 }
 0x1e5   : > { %785 = vmin.xlane.f32.xlu0 %v784_v9 }
 0x1e9   : > { %797 = vmax.xlane.f32.xlu0 %v796_v10 }
 0x1f4   : > { %v1901_v11 = vpop.f32.mrb[8].mxu1 }
 0x1f5   : > { %1034 = vst.msk [vmem:[#allocation2 + $0x18] sm:$0xff] %vm181_vm0, %v1901_v11  ;;  %v1022_v12 = vpop.f32.mrb[9].mxu1  ;;  %v1036_v13 = vsel %vm181_vm0, %v1901_v11, inf  ;;  %v1048_v14 = vsel %vm181_vm0, %v1901_v11, -inf }
 0x1f6   : > { %1033 = vst.msk [vmem:[#allocation2 + $0x10] sm:$0xff] %vm181_vm0, %v1022_v12  ;;  %v1035_v15 = vsel %vm181_vm0, %v1022_v12, inf  ;;  %v1047_v16 = vsel %vm181_vm0, %v1022_v12, -inf }
 0x1f7   : > { %v1037_v17 = vmin.f32 %v1035_v15, %v1036_v13  ;;  %v1049_v18 = vmax.f32 %v1047_v16, %v1048_v14 }
 0x1f9   : > { %1038 = vmin.xlane.f32.xlu1 %v1037_v17 }
 0x1fd   : > { %1050 = vmax.xlane.f32.xlu1 %v1049_v18 }
 0x208   : > { %v1943_v19 = vpop.f32.mrb[10].mxu1 }
 0x209   : > { %1544 = vst.msk [vmem:[#allocation2 + $0x38] sm:$0xff] %vm181_vm0, %v1943_v19  ;;  %v1532_v20 = vpop.f32.mrb[11].mxu1  ;;  %v1558_v21 = vsel %vm181_vm0, %v1943_v19, -inf  ;;  %v1546_v22 = vsel %vm181_vm0, %v1943_v19, inf }
 0x20a   : > { %1543 = vst.msk [vmem:[#allocation2 + $0x30] sm:$0xff] %vm181_vm0, %v1532_v20  ;;  %v1545_v23 = vsel %vm181_vm0, %v1532_v20, inf  ;;  %v1557_v24 = vsel %vm181_vm0, %v1532_v20, -inf }
 0x20b   : > { %v1559_v25 = vmax.f32 %v1557_v24, %v1558_v21  ;;  %v1547_v26 = vmin.f32 %v1545_v23, %v1546_v22  ;;  %v1576_v22 = vld [vmem:[#allocation2] sm:$0xff]  ;;  %v1577_v24 = vld [vmem:[#allocation2 + $0x8] sm:$0xff] }
 0x20c   : > { %v1580_v23 = vld [vmem:[#allocation2 + $0x20] sm:$0xff] }
 0x20d   : > { %1560 = vmax.xlane.f32.xlu1 %v1559_v25  ;;  %1548 = vmin.xlane.f32.xlu0 %v1547_v26  ;;  %v1578_v25 = vld [vmem:[#allocation2 + $0x10] sm:$0xff]  ;;  %v1579_v26 = vld [vmem:[#allocation2 + $0x18] sm:$0xff] }
 0x26e   : > { %v1294_v27 = vpop.xlane.xlu0 %1293  ;;  %v1306_v41 = vpop.xlane.xlu1 %1305 }
 0x26f   : > { %v1295_v43 = vrot.slane %v1294_v27, 4  ;;  %v1307_v44 = vrot.slane %v1306_v41, 4 }
 0x271   : > { %v1296_v45 = vmin.f32 %v1294_v27, %v1295_v43  ;;  %v1308_v47 = vmax.f32 %v1306_v41, %v1307_v44 }
 0x272   : > { %v786_v28 = vpop.xlane.xlu0 %785 }
 0x273   : > { %v787_v29 = vrot.slane %v786_v28, 4  ;;  %v1297_v50 = vrot.slane %v1296_v45, 2  ;;  %v1309_v52 = vrot.slane %v1308_v47, 2 }
 0x275   : > { %v788_v30 = vmin.f32 %v786_v28, %v787_v29  ;;  %v1298_v57 = vmin.f32 %v1296_v45, %v1297_v50  ;;  %v1310_v60 = vmax.f32 %v1308_v47, %v1309_v52  ;;  %v1581_v28 = vld [vmem:[#allocation2 + $0x28] sm:$0xff]  ;;  %v1582_v29 = vld [vmem:[#allocation2 + $0x30] sm:$0xff] }
 0x276   : > { %v798_v31 = vpop.xlane.xlu0 %797 }
 0x277   : > { %v789_v32 = vrot.slane %v788_v30, 2  ;;  %v799_v33 = vrot.slane %v798_v31, 4  ;;  %v1299_v63 = vrot.slane %v1298_v57, 1  ;;  %v1311_v1 = vrot.slane %v1310_v60, 1 }
 0x279   : > { %v800_v34 = vmax.f32 %v798_v31, %v799_v33  ;;  %v790_v35 = vmin.f32 %v788_v30, %v789_v32  ;;  %v1300_v3 = vmin.f32 %v1298_v57, %v1299_v63  ;;  %v1312_v4 = vmax.f32 %v1310_v60, %v1311_v1  ;;  %v1583_v30 = vld [vmem:[#allocation2 + $0x38] sm:$0xff] }
 0x27b   : > { %v801_v36 = vrot.slane %v800_v34, 2  ;;  %v791_v37 = vrot.slane %v790_v35, 1 }
 0x27d   : > { %v792_v38 = vmin.f32 %v790_v35, %v791_v37  ;;  %v802_v39 = vmax.f32 %v800_v34, %v801_v36 }
 0x27f   : > { %2022 = vpush %v792_v38  ;;  %v803_v40 = vrot.slane %v802_v39, 1 }
 0x281   : > { %v804_v42 = vmax.f32 %v802_v39, %v803_v40 }
 0x283   : > { %2024 = vpush %v804_v42 }
 0x286   : > { %v1039_v46 = vpop.xlane.xlu1 %1038 }
 0x287   : > { %v1040_v48 = vrot.slane %v1039_v46, 4 }
 0x289   : > { %v1041_v49 = vmin.f32 %v1039_v46, %v1040_v48 }
 0x28a   : > { %v1051_v51 = vpop.xlane.xlu1 %1050 }
 0x28b   : > { %v1042_v53 = vrot.slane %v1041_v49, 2  ;;  %v1052_v54 = vrot.slane %v1051_v51, 4 }
 0x28d   : > { %v1053_v55 = vmax.f32 %v1051_v51, %v1052_v54  ;;  %v1043_v56 = vmin.f32 %v1041_v49, %v1042_v53 }
 0x28f   : > { %v1054_v58 = vrot.slane %v1053_v55, 2  ;;  %v1044_v59 = vrot.slane %v1043_v56, 1 }
 0x291   : > { %v1045_v61 = vmin.f32 %v1043_v56, %v1044_v59  ;;  %v1055_v62 = vmax.f32 %v1053_v55, %v1054_v58 }
 0x293   : > { %2026 = vpush %v1045_v61  ;;  %v1056_v0 = vrot.slane %v1055_v62, 1 }
 0x295   : > { %v1057_v2 = vmax.f32 %v1055_v62, %v1056_v0 }
 0x297   : > { %2028 = vpush %v1057_v2 }
 0x298   : > { %2030 = vpush %v1300_v3 }
 0x299   : > { %2032 = vpush %v1312_v4 }
 0x29a   : > { %v1561_v5 = vpop.xlane.xlu1 %1560  ;;  %v1549_v6 = vpop.xlane.xlu0 %1548 }
 0x29b   : > { %v1562_v7 = vrot.slane %v1561_v5, 4  ;;  %v1550_v8 = vrot.slane %v1549_v6, 4 }
 0x29d   : > { %v1563_v9 = vmax.f32 %v1561_v5, %v1562_v7  ;;  %v1551_v10 = vmin.f32 %v1549_v6, %v1550_v8 }
 0x29f   : > { %v1564_v11 = vrot.slane %v1563_v9, 2  ;;  %v1552_v12 = vrot.slane %v1551_v10, 2 }
 0x2a1   : > { %v1565_v13 = vmax.f32 %v1563_v9, %v1564_v11  ;;  %v1553_v14 = vmin.f32 %v1551_v10, %v1552_v12 }
 0x2a3   : > { %v1554_v15 = vrot.slane %v1553_v14, 1  ;;  %v1566_v16 = vrot.slane %v1565_v13, 1 }
 0x2a5   : > { %v1555_v17 = vmin.f32 %v1553_v14, %v1554_v15  ;;  %v1567_v18 = vmax.f32 %v1565_v13, %v1566_v16 }
 0x2a7   : > { %2034 = vpush %v1555_v17 }
 0x2a8   : > { %2036 = vpush %v1567_v18 }
 0x2b0   : > { %s2023_s17 = spop %2022 }
 0x2b4   : > { %s2025_s18 = spop %2024 }
 0x2c4   : > { %s2027_s19 = spop %2026 }
 0x2c5   : > { %s1059_s25 = smin.f32 %s2027_s19, %s2023_s17 }
 0x2c8   : > { %s2029_s20 = spop %2028 }
 0x2c9   : > { %s2031_s21 = spop %2030  ;;  %s1060_s23 = smax.f32 %s2029_s20, %s2025_s18 }
 0x2ca   : > { %s2033_s24 = spop %2032  ;;  %s1314_s26 = smin.f32 %s2031_s21, %s1059_s25 }
 0x2cb   : > { %s1315_s27 = smax.f32 %s2033_s24, %s1060_s23 }
 0x2d8   : > { %s2035_s28 = spop %2034 }
 0x2d9   : > { %s1569_s29 = smin.f32 %s2035_s28, %s1314_s26  ;;  %s2037_s30 = spop %2036 }
 0x2da   : > { %s1570_s4 = smax.f32 %s2037_s30, %s1315_s27  ;;  %v1584_v21 = vstv %s1569_s29 }
 0x2db   : > { %s1571_s5 = ssub.f32 %s1570_s4, %s1569_s29  ;;  %v1585_v27 = vsub.f32 %v1576_v22, %v1584_v21  ;;  %v1586_v31 = vsub.f32 %v1577_v24, %v1584_v21  ;;  %v1587_v32 = vsub.f32 %v1578_v25, %v1584_v21  ;;  %v1588_v33 = vsub.f32 %v1579_v26, %v1584_v21 }
 0x2dc   : > { %v1589_v34 = vsub.f32 %v1580_v23, %v1584_v21  ;;  %v1590_v35 = vsub.f32 %v1581_v28, %v1584_v21  ;;  %v1591_v36 = vsub.f32 %v1582_v29, %v1584_v21  ;;  %v1592_v37 = vsub.f32 %v1583_v30, %v1584_v21 }
 0x2dd   : > { %s1572_s6 = sadd.f32 1e-08, %s1571_s5 }
 0x2df   : > { %v1573_v19 = vstv %s1572_s6 }
 0x2e0   : > { %2048 = vrcp.f32 %v1573_v19 }
 0x2ea   : > { %v2049_v20 = vpop.eup %2048 }
 0x2eb   : > { %2038 = vpush %v2049_v20 }
 0x31c   : > { %s2039_s7 = spop %2038 }
 0x31d   : > { %v1593_v38 = vstv %s2039_s7 }
 0x31e   : > { %v1594_v39 = vmul.f32 %v1593_v38, %v1585_v27  ;;  %v1595_v40 = vmul.f32 %v1593_v38, %v1586_v31  ;;  %v1596_v41 = vmul.f32 %v1593_v38, %v1587_v32  ;;  %v1597_v42 = vmul.f32 %v1593_v38, %v1588_v33 }
 0x31f   : > { %v1598_v43 = vmul.f32 %v1593_v38, %v1589_v34  ;;  %v1599_v44 = vmul.f32 %v1593_v38, %v1590_v35  ;;  %v1600_v45 = vmul.f32 %v1593_v38, %v1591_v36  ;;  %v1601_v46 = vmul.f32 %v1593_v38, %v1592_v37 }
 0x320   : > { %1602 = vst.msk [vmem:[%s170_s10] sm:$0xff] %vm181_vm0, %v1594_v39  ;;  %1603 = vst.msk [vmem:[%s170_s10 + $0x8] sm:$0xff] %vm181_vm0, %v1595_v40 }
 0x321   : > { %1604 = vst.msk [vmem:[%s170_s10 + $0x10] sm:$0xff] %vm181_vm0, %v1596_v41  ;;  %1605 = vst.msk [vmem:[%s170_s10 + $0x18] sm:$0xff] %vm181_vm0, %v1597_v42 }
 0x322   : > { %1606 = vst.msk [vmem:[%s170_s10 + $0x20] sm:$0xff] %vm181_vm0, %v1598_v43  ;;  %1607 = vst.msk [vmem:[%s170_s10 + $0x28] sm:$0xff] %vm181_vm0, %v1599_v44 }
 0x323   : > { %1608 = vst.msk [vmem:[%s170_s10 + $0x30] sm:$0xff] %vm181_vm0, %v1600_v45  ;;  %1609 = vst.msk [vmem:[%s170_s10 + $0x38] sm:$0xff] %vm181_vm0, %v1601_v46 }
 0x324 PF: > { %s13_s12 = sadd.s32 1, %s2056_s12  }
 0x325   : > { %p10_p4 = scmp.ge.s32.totalorder %s13_s12, 4  }
 0x327   :  { %12 = sbr.rel (!%p10_p4) target bundleno = 1 (0x1), region = 66 }

</bundles_post_ra>
